<compile_context>
chip_gen: v5e
topology: v5e:2x2
jax: 0.10.0
libtpu: 0.0.40
codegen_flags: <defaults>
</compile_context>

<pallas_src>
import jax
import jax.numpy as jnp
from jax.experimental import pallas as pl
from jax.experimental.pallas import tpu as pltpu

LANE = 128     # lane width of the packed weight slab
D_IN = 4
D_H1 = 8
D_H2 = 20
D_OUT = 7
D_OUT_PAD = 8  # output lanes written by the kernel (7 padded to 8)


def decoder_kernel(z_ref, w_ref, b_ref, out_ref):
    # z_ref:   (TB, 4)        f32  -- one batch tile
    # w_ref:   (3, 128, 128)  f32  -- packed, zero-padded weight slab (resident)
    # b_ref:   (3, 1, 128)    f32  -- packed, zero-padded bias slab (resident)
    # out_ref: (TB, 8)        f32
    #
    # Only the active sub-blocks of the slab are loaded per layer (keeps vreg
    # pressure and MXU pushes minimal); zero-padding in the slab makes the
    # sliced sub-matmuls exactly equal to the unpadded linear layers.
    z = z_ref[...]                                                     # (TB, 4)
    h = jnp.dot(z, w_ref[0, :D_IN, :D_H1],
                preferred_element_type=jnp.float32)                    # (TB, 8)
    h = jnp.maximum(h + b_ref[0, :, :D_H1], 0.0)
    h = jnp.dot(h, w_ref[1, :D_H1, :D_H2],
                preferred_element_type=jnp.float32)                    # (TB, 20)
    h = jnp.maximum(h + b_ref[1, :, :D_H2], 0.0)
    out = jnp.dot(h, w_ref[2, :D_H2, :D_OUT_PAD],
                  preferred_element_type=jnp.float32)                  # (TB, 8)
    out_ref[...] = out + b_ref[2, :, :D_OUT_PAD]


def pack_params(w1, b1, w2, b2, w3, b3):
    """Zero-pad + pack the 3 linear layers into two lane/sublane-aligned slabs."""
    w_slab = jnp.zeros((3, LANE, LANE), jnp.float32)
    w_slab = w_slab.at[0, :D_IN, :D_H1].set(w1)
    w_slab = w_slab.at[1, :D_H1, :D_H2].set(w2)
    w_slab = w_slab.at[2, :D_H2, :D_OUT].set(w3)
    b_slab = jnp.zeros((3, 1, LANE), jnp.float32)
    b_slab = b_slab.at[0, 0, :D_H1].set(b1)
    b_slab = b_slab.at[1, 0, :D_H2].set(b2)
    b_slab = b_slab.at[2, 0, :D_OUT].set(b3)
    return w_slab, b_slab


def _choose_tiling(B, tb_max):
    """Pick TB (multiple of 8, <= ~tb_max) minimizing padding waste and keeping
    >= 4 grid steps when the batch is big enough (keeps both v7x TCs busy)."""
    min_steps = 4 if B >= 32 else 1
    steps = max(pl.cdiv(B, tb_max), min_steps)
    tb = ((pl.cdiv(B, steps) + 7) // 8) * 8
    steps = pl.cdiv(B, tb)
    b_pad = steps * tb
    return tb, steps, b_pad


def decoder_forward(z, w_slab, b_slab, *, tb_max=2048):
    """z: (B, 4) float32 -> (B, 7) float32 via a Pallas kernel.

    tb_max=2048 keeps the per-step VMEM footprint ~4-5 MiB (double-buffered
    input/output tiles + resident weight slab), safely under v5e's 16 MiB
    default scoped-VMEM limit while amortizing the ~0.35us/step overhead.
    """
    B, d_in = z.shape
    assert d_in == D_IN
    tb, steps, b_pad = _choose_tiling(B, tb_max)

    # Only the batch dim is padded; no lane-padding pass in the wrapper.
    z_in = z if b_pad == B else jnp.pad(z, ((0, b_pad - B), (0, 0)))

    flops = 2 * b_pad * (D_IN * D_H1 + D_H1 * D_H2 + D_H2 * D_OUT)
    bytes_accessed = (b_pad * D_IN * 4 + b_pad * D_OUT_PAD * 4
                      + int(w_slab.size) * 4 + int(b_slab.size) * 4)

    out = pl.pallas_call(
        decoder_kernel,
        out_shape=jax.ShapeDtypeStruct((b_pad, D_OUT_PAD), jnp.float32),
        grid_spec=pltpu.PrefetchScalarGridSpec(
            num_scalar_prefetch=0,
            grid=(steps,),
            in_specs=[
                # Narrow input block: last dim == full array dim (4) is legal.
                pl.BlockSpec((tb, D_IN), lambda i: (i, 0)),
                # Constant block index -> weights/biases stay resident in VMEM
                # across all batch-grid steps (single DMA).
                pl.BlockSpec((3, LANE, LANE), lambda i: (0, 0, 0)),
                pl.BlockSpec((3, 1, LANE), lambda i: (0, 0, 0)),
            ],
            out_specs=pl.BlockSpec((tb, D_OUT_PAD), lambda i: (i, 0)),
        ),
        compiler_params=pltpu.CompilerParams(
            dimension_semantics=("parallel",),  # megacore sharding on v7x
        ),
        cost_estimate=pl.CostEstimate(
            flops=flops, transcendentals=0, bytes_accessed=bytes_accessed),
    )(z_in, w_slab, b_slab)

    return out[:B, :D_OUT]


def init_params(key):
    """Kaiming-uniform-ish init matching nn.Linear shapes.

    Weights are stored transposed as (in, out) so the kernel computes x @ W,
    matching PyTorch's y = x @ W.T + b.
    """
    def linear(key, fan_in, fan_out):
        kw, kb = jax.random.split(key)
        bound = 1.0 / jnp.sqrt(fan_in)
        w = jax.random.uniform(kw, (fan_in, fan_out), jnp.float32, -bound, bound)
        b = jax.random.uniform(kb, (fan_out,), jnp.float32, -bound, bound)
        return w, b

    k1, k2, k3 = jax.random.split(key, 3)
    w1, b1 = linear(k1, D_IN, D_H1)
    w2, b2 = linear(k2, D_H1, D_H2)
    w3, b3 = linear(k3, D_H2, D_OUT)
    return w1, b1, w2, b2, w3, b3


def reference_forward(z, w1, b1, w2, b2, w3, b3):
    h = jnp.maximum(z @ w1 + b1, 0.0)
    h = jnp.maximum(h @ w2 + b2, 0.0)
    return h @ w3 + b3


if __name__ == "__main__":
    key = jax.random.PRNGKey(0)
    k_params, k_in1, k_in2 = jax.random.split(key, 3)

    w1, b1, w2, b2, w3, b3 = init_params(k_params)
    w_slab, b_slab = pack_params(w1, b1, w2, b2, w3, b3)

    # Small batch (single grid step, TB=8).
    z_small = jax.random.normal(k_in1, (8, D_IN), jnp.float32)
    out_small = jax.block_until_ready(decoder_forward(z_small, w_slab, b_slab))
    ref_small = reference_forward(z_small, w1, b1, w2, b2, w3, b3)
    assert out_small.shape == (8, D_OUT)
    assert jnp.allclose(out_small, ref_small, atol=1e-5, rtol=1e-5)

    # Larger, non-multiple batch exercising the adaptive multi-step batch grid
    # (B=700 -> 4 steps of TB=176, only 4 padding rows).
    z_big = jax.random.normal(k_in2, (700, D_IN), jnp.float32)
    out_big = jax.block_until_ready(decoder_forward(z_big, w_slab, b_slab))
    ref_big = reference_forward(z_big, w1, b1, w2, b2, w3, b3)
    assert out_big.shape == (700, D_OUT)
    assert jnp.allclose(out_big, ref_big, atol=1e-5, rtol=1e-5)

    print("KERNEL_OK")
</pallas_src>

<mosaic_0001>
module attributes {stable_mosaic.version = 11 : i64} {
  func.func @decoder_kernel(%arg0: i32, %arg1: memref<8x4xf32, #tpu.memory_space<vmem>>, %arg2: memref<3x128x128xf32, #tpu.memory_space<vmem>>, %arg3: memref<3x1x128xf32, #tpu.memory_space<vmem>>, %arg4: memref<8x8xf32, #tpu.memory_space<vmem>>) attributes {dimension_semantics = [#tpu.dimension_semantics<parallel>], iteration_bounds = array<i64: 1>, scalar_prefetch = 0 : i64, scratch_operands = 0 : i64, tpu.core_type = #tpu.core_type<tc>, window_params = [{transform_indices = @transform_0, window_bounds = array<i64: 8, 4>}, {pipeline_mode = #tpu.pipeline_mode<synchronous>, transform_indices = @transform_1, window_bounds = array<i64: 3, 128, 128>}, {pipeline_mode = #tpu.pipeline_mode<synchronous>, transform_indices = @transform_2, window_bounds = array<i64: 3, 1, 128>}, {transform_indices = @transform_3, window_bounds = array<i64: 8, 8>}]} {
    %c0 = arith.constant 0 : index
    %c0_0 = arith.constant 0 : index
    %0 = vector.load %arg1[%c0, %c0_0] : memref<8x4xf32, #tpu.memory_space<vmem>>, vector<8x4xf32>
    %c0_1 = arith.constant 0 : index
    %c0_2 = arith.constant 0 : index
    %c0_3 = arith.constant 0 : index
    %1 = vector.load %arg2[%c0_1, %c0_2, %c0_3] : memref<3x128x128xf32, #tpu.memory_space<vmem>>, vector<1x4x8xf32>
    %2 = vector.shape_cast %1 : vector<1x4x8xf32> to vector<4x8xf32>
    %cst = arith.constant dense<0.000000e+00> : vector<8x8xf32>
    %3 = tpu.matmul %0, %2, %cst {dimension_numbers = #tpu.dot_dimension_numbers<[1], [0], [0], [1], [0, 0, 1, 1], [], []>} : vector<8x4xf32>, vector<4x8xf32>, vector<8x8xf32> -> vector<8x8xf32>
    %c0_4 = arith.constant 0 : index
    %c0_5 = arith.constant 0 : index
    %c0_6 = arith.constant 0 : index
    %4 = vector.load %arg3[%c0_4, %c0_5, %c0_6] : memref<3x1x128xf32, #tpu.memory_space<vmem>>, vector<1x1x8xf32>
    %5 = vector.shape_cast %4 : vector<1x1x8xf32> to vector<1x8xf32>
    %6 = vector.broadcast %5 : vector<1x8xf32> to vector<8x8xf32>
    %7 = arith.addf %3, %6 : vector<8x8xf32>
    %cst_7 = arith.constant 0.000000e+00 : f32
    %8 = vector.broadcast %cst_7 : f32 to vector<8x8xf32>
    %9 = arith.maximumf %7, %8 : vector<8x8xf32>
    %c1 = arith.constant 1 : index
    %c0_8 = arith.constant 0 : index
    %c0_9 = arith.constant 0 : index
    %10 = vector.load %arg2[%c1, %c0_8, %c0_9] : memref<3x128x128xf32, #tpu.memory_space<vmem>>, vector<1x8x20xf32>
    %11 = vector.shape_cast %10 : vector<1x8x20xf32> to vector<8x20xf32>
    %cst_10 = arith.constant dense<0.000000e+00> : vector<8x20xf32>
    %12 = tpu.matmul %9, %11, %cst_10 {dimension_numbers = #tpu.dot_dimension_numbers<[1], [0], [0], [1], [0, 0, 1, 1], [], []>} : vector<8x8xf32>, vector<8x20xf32>, vector<8x20xf32> -> vector<8x20xf32>
    %c1_11 = arith.constant 1 : index
    %c0_12 = arith.constant 0 : index
    %c0_13 = arith.constant 0 : index
    %13 = vector.load %arg3[%c1_11, %c0_12, %c0_13] : memref<3x1x128xf32, #tpu.memory_space<vmem>>, vector<1x1x20xf32>
    %14 = vector.shape_cast %13 : vector<1x1x20xf32> to vector<1x20xf32>
    %15 = vector.broadcast %14 : vector<1x20xf32> to vector<8x20xf32>
    %16 = arith.addf %12, %15 : vector<8x20xf32>
    %cst_14 = arith.constant 0.000000e+00 : f32
    %17 = vector.broadcast %cst_14 : f32 to vector<8x20xf32>
    %18 = arith.maximumf %16, %17 : vector<8x20xf32>
    %c2 = arith.constant 2 : index
    %c0_15 = arith.constant 0 : index
    %c0_16 = arith.constant 0 : index
    %19 = vector.load %arg2[%c2, %c0_15, %c0_16] : memref<3x128x128xf32, #tpu.memory_space<vmem>>, vector<1x20x8xf32>
    %20 = vector.shape_cast %19 : vector<1x20x8xf32> to vector<20x8xf32>
    %cst_17 = arith.constant dense<0.000000e+00> : vector<8x8xf32>
    %21 = tpu.matmul %18, %20, %cst_17 {dimension_numbers = #tpu.dot_dimension_numbers<[1], [0], [0], [1], [0, 0, 1, 1], [], []>} : vector<8x20xf32>, vector<20x8xf32>, vector<8x8xf32> -> vector<8x8xf32>
    %c2_18 = arith.constant 2 : index
    %c0_19 = arith.constant 0 : index
    %c0_20 = arith.constant 0 : index
    %22 = vector.load %arg3[%c2_18, %c0_19, %c0_20] : memref<3x1x128xf32, #tpu.memory_space<vmem>>, vector<1x1x8xf32>
    %23 = vector.shape_cast %22 : vector<1x1x8xf32> to vector<1x8xf32>
    %24 = vector.broadcast %23 : vector<1x8xf32> to vector<8x8xf32>
    %25 = arith.addf %21, %24 : vector<8x8xf32>
    %c0_21 = arith.constant 0 : index
    %c0_22 = arith.constant 0 : index
    %26 = vector.load %arg4[%c0_21, %c0_22] : memref<8x8xf32, #tpu.memory_space<vmem>>, vector<8x8xf32>
    tpu.vector_store %arg4[%c0_21, %c0_22], %25 {strides = array<i32>} : memref<8x8xf32, #tpu.memory_space<vmem>>, vector<8x8xf32>,
    return
  }
  func.func @transform_0(%arg0: i32) -> (i32, i32) {
    %c0_i32 = arith.constant 0 : i32
    %c0_i32_0 = arith.constant 0 : i32
    return %arg0, %c0_i32 : i32, i32
  }
  func.func @transform_1(%arg0: i32) -> (i32, i32, i32) {
    %c0_i32 = arith.constant 0 : i32
    %c0_i32_0 = arith.constant 0 : i32
    %c0_i32_1 = arith.constant 0 : i32
    %c0_i32_2 = arith.constant 0 : i32
    return %c0_i32, %c0_i32_0, %c0_i32_1 : i32, i32, i32
  }
  func.func @transform_2(%arg0: i32) -> (i32, i32, i32) {
    %c0_i32 = arith.constant 0 : i32
    %c0_i32_0 = arith.constant 0 : i32
    %c0_i32_1 = arith.constant 0 : i32
    %c0_i32_2 = arith.constant 0 : i32
    return %c0_i32, %c0_i32_0, %c0_i32_1 : i32, i32, i32
  }
  func.func @transform_3(%arg0: i32) -> (i32, i32) {
    %c0_i32 = arith.constant 0 : i32
    %c0_i32_0 = arith.constant 0 : i32
    return %arg0, %c0_i32 : i32, i32
  }
}

</mosaic_0001>

<bundles_post_ra>
// kernel: tpu_custom_call.1
= control target key start
LH: loop header
LB: loop body
LE: loop exit
PB: predicated region body
PF: predicated region fallthrough
CT: control target
= control target key end

     0   :  { %8 = vsyncpa [#allocation3], 0  ;;  %s262_s0 = inlined_call_operand.vmem [shape: f32[8,4], index: 0, kind: input, shape index: {}]   ;;  %s263_s1 = inlined_call_operand.hbm [shape: f32[3,128,128], index: 1, kind: input, shape index: {}]   ;;  %s264_s2 = inlined_call_operand.vmem [shape: f32[3,1,128], index: 2, kind: input, shape index: {}]   ;;  %s265_s3 = inlined_call_operand.hbm [shape: f32[8,8], index: 3, kind: output, shape index: {}]  }
   0x1   :  { %9 = vsyncpa [#allocation4], 0  ;;  %s16_s14 = sshll.u32 %s263_s1, 4  ;;  %s218_s15 = smov [#allocation2]   ;;  %s17_s14 = int_to_ptr.hbm [resolvable:$true] %s16_s14 }
   0x2   :  { %s18_s16 = sshll.u32 %s218_s15, 4  ;;  %s219_s17 = smov 128   ;;  %s19_s16 = int_to_ptr.vmem [resolvable:$true] %s18_s16 }
   0x3   :  { %s220_s18 = smov 8  }
   0x4   :  { %24 = dma.hbm_to_vmem [thread:$0]  %s17_s14, 6144, %s19_s16, [#allocation3], %s219_s17, %s219_s17, %s220_s18  }
   0x5   :  { %214 = dma.done.wait [#allocation3], 6144  }
   0x6   :  { %215 = vsyncadd [#allocation3], 4294961152  ;;  %vm41_vm0 = vcmask 1043456   ;;  %vm37_vm1 = vcmask 31744   ;;  %v32_v0 = vld [vmem:[#allocation2] sm:$0xf] }
   0x7   :  { %v31_v1 = vld [vmem:[%s262_s0] sm:$0xff]  ;;  %152 = vmatpush.msk.msra.mxu0 %vm41_vm0, %v32_v0  ;;  %vm73_vm2 = vcmask 64512   ;;  %v101_v7 = vld [vmem:[#allocation2 + $0x110] sm:$0xf]  ;;  %v100_v8 = vld [vmem:[#allocation2 + $0x108] sm:$0xff]  ;;  %vm107_vm3 = vcmask 162816  }
   0x8   :  { %153 = vmatmul.msk.f32.vlgmr.msra.gmra.mxu0 %vm37_vm1, %v31_v1  ;;  %v67_v2 = vld [vmem:[#allocation2 + $0x80] sm:$0xff]  ;;  %157 = vmatpush.msk.msra.mxu2 %vm41_vm0, %v101_v7  ;;  %s221_s25 = smov [#allocation5]   ;;  %s142_s29 = sshll.u32 %s265_s3, 4  ;;  %s143_s29 = int_to_ptr.hbm [resolvable:$true] %s142_s29 }
   0x9   :  { %92 = vmatpush.msra.mxu1 %v67_v2  ;;  %v163_v3 = vld [vmem:[%s264_s2] ss:$0 sm:$0xff]  ;;  %v164_v10 = vld [vmem:[%s264_s2 + $0x1] ss:$0 sm:$0xff]  ;;  %v165_v14 = vld [vmem:[%s264_s2 + $0x2] ss:$0 sm:$0xff] }
   0xa   :  { %128 = vmatpush.msra.mxu2 %v100_v8  ;;  %v99_v9 = vld [vmem:[#allocation2 + $0x100] sm:$0xff]  ;;  %s140_s26 = sshll.u32 %s221_s25, 4  ;;  %s141_s26 = int_to_ptr.vmem [resolvable:$true] %s140_s26 }
   0xc   :  { %129 = vmatpush.msra.mxu2 %v99_v9 }
  0x85   :  { %v62_v4 = vpop.f32.mrf.mxu0 }
  0x86   :  { %v63_v5 = vadd.f32 %v163_v3, %v62_v4 }
  0x88   :  { %v65_v6 = vmax.f32 %v63_v5, 0.0 }
  0x8a   :  { %155 = vmatmul.msk.f32.vlgmr.msra.gmra.mxu1 %vm73_vm2, %v65_v6 }
 0x107   :  { %v94_v11 = vpop.f32.mrf.mxu1 }
 0x108   :  { %v95_v12 = vadd.f32 %v164_v10, %v94_v11 }
 0x10a   :  { %v97_v13 = vmax.f32 %v95_v12, 0.0 }
 0x10c   :  { %158 = vmatmul.msk.f32.vlgmr.msra.gmra.mxu2 %vm107_vm3, %v97_v13 }
 0x18f   :  { %v131_v15 = vpop.f32.mrf.mxu2 }
 0x190   :  { %v132_v16 = vadd.f32 %v165_v14, %v131_v15 }
 0x192   :  { %134 = vst.msk [vmem:[#allocation5] sm:$0xff] %vm73_vm2, %v132_v16 }
 0x193   :  { %145 = dma.vmem_to_hbm [thread:$0]  %s141_s26, 128, %s143_s29, [#allocation4]  }
 0x194   :  { %216 = dma.done.wait [#allocation4], 128  }
 0x195   :  { %217 = vsyncadd [#allocation4], 4294967168 }
 0x196   :  { %150 = vsyncpa [#allocation3], 1 }
 0x197   :  { %151 = vsyncpa [#allocation4], 1 }

</bundles_post_ra>
